<compile_context>
chip_gen: v7x
topology: tpu7x:2x2x1
jax: 0.10.0
libtpu: 0.0.40
codegen_flags: <defaults>
</compile_context>

<pallas_src>
import jax
import jax.numpy as jnp
from jax.experimental import pallas as pl
from jax.experimental.pallas import tpu as pltpu


# --------------------------------------------------------------------------
# Kernel: plain 3-layer MLP on a batch tile (all agent packing done outside).
# --------------------------------------------------------------------------
def _mlp_kernel(x_ref, w1_ref, b1_ref, w2_ref, b2_ref, w3_ref, b3_ref, o_ref):
    x = x_ref[...].astype(jnp.float32)                       # (Bt, D_in)
    h = jnp.tanh(
        jnp.dot(x, w1_ref[...], preferred_element_type=jnp.float32)
        + b1_ref[...])
    h = jnp.tanh(
        jnp.dot(h, w2_ref[...], preferred_element_type=jnp.float32)
        + b2_ref[...])
    y = (jnp.dot(h, w3_ref[...], preferred_element_type=jnp.float32)
         + b3_ref[...])
    o_ref[...] = y.astype(o_ref.dtype)                       # single packed store


# --------------------------------------------------------------------------
# Wrapper helpers.
# --------------------------------------------------------------------------
def _round_up(x, m):
    return ((x + m - 1) // m) * m


def _block_diag(w):
    """(A, k, m) per-agent weights -> (A*k, A*m) block-diagonal matrix."""
    A, k, m = w.shape
    eye = jnp.eye(A, dtype=w.dtype)
    out = jnp.einsum('akm,ab->akbm', w, eye)                 # zeros off-diagonal
    return out.reshape(A * k, A * m)


def _is_v7x():
    try:
        return "v7" in jax.devices()[0].device_kind.lower()
    except Exception:  # pragma: no cover - defensive
        return False


def _choose_batch_tile(b_eff, max_tile):
    # v7x has 2 TensorCores per chip: make sure "parallel" has >=2 grid steps.
    want_splits = 2 if (_is_v7x() and b_eff >= 16) else 1
    bt = min(max_tile, pl.cdiv(b_eff, want_splits))
    if bt >= b_eff:
        return b_eff                      # full dim is always a legal block
    return _round_up(bt, 8)               # sublane-aligned tile


def _run_mlp(x_eff, W1, B1, W2, B2, W3, B3, max_batch_tile):
    """x_eff: (B_eff, D_in) -> (B_eff, N_out) via the Pallas kernel."""
    b_eff, d_in = x_eff.shape
    n_out_eff = W3.shape[-1]
    bt = _choose_batch_tile(b_eff, max_batch_tile)
    grid = (pl.cdiv(b_eff, bt),)

    const2 = lambda i: (0, 0)
    return pl.pallas_call(
        _mlp_kernel,
        out_shape=jax.ShapeDtypeStruct((b_eff, n_out_eff), x_eff.dtype),
        grid_spec=pltpu.PrefetchScalarGridSpec(
            num_scalar_prefetch=0,
            grid=grid,
            in_specs=[
                # Batch-tiled activations.
                pl.BlockSpec((bt, d_in), lambda i: (i, 0)),
                # Untiled, VMEM-resident packed weights/biases.
                pl.BlockSpec(W1.shape, const2),
                pl.BlockSpec(B1.shape, const2),
                pl.BlockSpec(W2.shape, const2),
                pl.BlockSpec(B2.shape, const2),
                pl.BlockSpec(W3.shape, const2),
                pl.BlockSpec(B3.shape, const2),
            ],
            out_specs=pl.BlockSpec((bt, n_out_eff), lambda i: (i, 0)),
        ),
        compiler_params=pltpu.CompilerParams(
            dimension_semantics=("parallel",),   # independent batch tiles
        ),
    )(x_eff, W1, B1, W2, B2, W3, B3)


def multi_agent_mlp_forward(x, params, *, n_agents, centralised, share_params,
                            max_batch_tile=4096):
    """x: (B, n_agents, n_agent_inputs) -> (B, n_agents, n_agent_outputs)."""
    B, A, n_in = x.shape
    assert A == n_agents
    w1, b1, w2, b2, w3, b3 = params
    hidden = w1.shape[-1]
    n_out = w3.shape[-1]

    if share_params:
        W1, B1 = w1[0], b1[0]                                # (D_in, H), (1, H)
        W2, B2 = w2[0], b2[0]
        W3, B3 = w3[0], b3[0]
        if centralised:
            # One MLP run per batch row; broadcast across agents afterwards.
            x_eff = x.reshape(B, A * n_in)
        else:
            # Fold agents into the batch: A-fold fewer matmuls, denser vregs.
            x_eff = x.reshape(B * A, n_in)
    else:
        # Pack all per-agent nets into one matmul per layer.
        x_eff = x.reshape(B, A * n_in)
        if centralised:
            # Every agent consumes the full input: dense concat along N.
            W1 = jnp.concatenate([w1[a] for a in range(A)], axis=-1)
        else:
            W1 = _block_diag(w1)                             # (A*n_in, A*H)
        B1 = b1.reshape(1, A * hidden)
        W2 = _block_diag(w2)                                 # (A*H, A*H)
        B2 = b2.reshape(1, A * hidden)
        W3 = _block_diag(w3)                                 # (A*H, A*n_out)
        B3 = b3.reshape(1, A * n_out)

    out_slab = _run_mlp(x_eff, W1, B1, W2, B2, W3, B3, max_batch_tile)

    if share_params and centralised:
        return jnp.broadcast_to(out_slab[:, None, :], (B, A, n_out))
    return out_slab.reshape(B, A, n_out)


# --------------------------------------------------------------------------
# Params + pure-JAX reference (mirrors MultiAgentMLP.forward, depth=2).
# --------------------------------------------------------------------------
def init_params(key, *, n_in, n_out, n_agents, hidden, centralised,
                share_params):
    """Deterministic PyTorch-Linear-style uniform init. depth=2 -> 3 layers."""
    D_in = n_in * n_agents if centralised else n_in
    A_w = 1 if share_params else n_agents
    ks = jax.random.split(key, 6)

    def u(k, shape, fan_in):
        bound = 1.0 / jnp.sqrt(jnp.float32(fan_in))
        return jax.random.uniform(k, shape, jnp.float32, -bound, bound)

    w1 = u(ks[0], (A_w, D_in, hidden), D_in)
    b1 = u(ks[1], (A_w, 1, hidden), D_in)
    w2 = u(ks[2], (A_w, hidden, hidden), hidden)
    b2 = u(ks[3], (A_w, 1, hidden), hidden)
    w3 = u(ks[4], (A_w, hidden, n_out), hidden)
    b3 = u(ks[5], (A_w, 1, n_out), hidden)
    return w1, b1, w2, b2, w3, b3


def reference_forward(x, params, *, n_agents, centralised, share_params):
    """Pure-JAX reference mirroring MultiAgentMLP.forward (f32 math)."""
    w1, b1, w2, b2, w3, b3 = params
    B, A, n_in = x.shape
    if centralised:
        xi = jnp.broadcast_to(x.reshape(B, 1, A * n_in), (B, A, A * n_in))
    else:
        xi = x
    if share_params:
        bc = lambda p: jnp.broadcast_to(p, (A,) + p.shape[1:])
        w1, b1, w2, b2, w3, b3 = map(bc, (w1, b1, w2, b2, w3, b3))
    hi = jax.lax.Precision.HIGHEST
    h = jnp.tanh(jnp.einsum('bad,adh->bah', xi, w1, precision=hi)
                 + b1[None, :, 0, :])
    h = jnp.tanh(jnp.einsum('bah,ahk->bak', h, w2, precision=hi)
                 + b2[None, :, 0, :])
    y = jnp.einsum('bah,aho->bao', h, w3, precision=hi) + b3[None, :, 0, :]
    return y


if __name__ == "__main__":
    key = jax.random.PRNGKey(0)
    n_agents, n_in, n_out, hidden = 6, 3, 2, 32
    kx, kp = jax.random.split(key)

    # (B, max_batch_tile): small single-tile case and a case that forces a
    # multi-step grid with a partial last tile (B*A not a multiple of tile).
    for B, tile in ((64, 4096), (200, 64)):
        x = jax.random.normal(kx, (B, n_agents, n_in), jnp.float32)
        for centralised in (False, True):
            for share_params in (False, True):
                params = init_params(
                    kp, n_in=n_in, n_out=n_out, n_agents=n_agents,
                    hidden=hidden, centralised=centralised,
                    share_params=share_params)
                out = multi_agent_mlp_forward(
                    x, params, n_agents=n_agents, centralised=centralised,
                    share_params=share_params, max_batch_tile=tile)
                out = jax.block_until_ready(out)
                assert out.shape == (B, n_agents, n_out), out.shape

                ref = reference_forward(
                    x, params, n_agents=n_agents, centralised=centralised,
                    share_params=share_params)
                assert jnp.allclose(out, ref, atol=3e-5, rtol=3e-5), (
                    f"mismatch B={B} centralised={centralised}, "
                    f"share_params={share_params}")

    print("KERNEL_OK")
</pallas_src>

<mosaic_0001>
module attributes {stable_mosaic.version = 11 : i64} {
  func.func @_mlp_kernel(%arg0: i32, %arg1: memref<64x18xf32, #tpu.memory_space<vmem>>, %arg2: memref<18x192xf32, #tpu.memory_space<vmem>>, %arg3: memref<1x192xf32, #tpu.memory_space<vmem>>, %arg4: memref<192x192xf32, #tpu.memory_space<vmem>>, %arg5: memref<1x192xf32, #tpu.memory_space<vmem>>, %arg6: memref<192x12xf32, #tpu.memory_space<vmem>>, %arg7: memref<1x12xf32, #tpu.memory_space<vmem>>, %arg8: memref<64x12xf32, #tpu.memory_space<vmem>>) attributes {dimension_semantics = [#tpu.dimension_semantics<parallel>], iteration_bounds = array<i64: 1>, scalar_prefetch = 0 : i64, scratch_operands = 0 : i64, tpu.core_type = #tpu.core_type<tc>, window_params = [{transform_indices = @transform_0, window_bounds = array<i64: 64, 18>}, {pipeline_mode = #tpu.pipeline_mode<synchronous>, transform_indices = @transform_1, window_bounds = array<i64: 18, 192>}, {pipeline_mode = #tpu.pipeline_mode<synchronous>, transform_indices = @transform_2, window_bounds = array<i64: 1, 192>}, {pipeline_mode = #tpu.pipeline_mode<synchronous>, transform_indices = @transform_3, window_bounds = array<i64: 192, 192>}, {pipeline_mode = #tpu.pipeline_mode<synchronous>, transform_indices = @transform_4, window_bounds = array<i64: 1, 192>}, {pipeline_mode = #tpu.pipeline_mode<synchronous>, transform_indices = @transform_5, window_bounds = array<i64: 192, 12>}, {pipeline_mode = #tpu.pipeline_mode<synchronous>, transform_indices = @transform_6, window_bounds = array<i64: 1, 12>}, {transform_indices = @transform_7, window_bounds = array<i64: 64, 12>}]} {
    %c0 = arith.constant 0 : index
    %c0_0 = arith.constant 0 : index
    %0 = vector.load %arg1[%c0, %c0_0] : memref<64x18xf32, #tpu.memory_space<vmem>>, vector<64x18xf32>
    %c0_1 = arith.constant 0 : index
    %c0_2 = arith.constant 0 : index
    %1 = vector.load %arg2[%c0_1, %c0_2] : memref<18x192xf32, #tpu.memory_space<vmem>>, vector<18x192xf32>
    %cst = arith.constant dense<0.000000e+00> : vector<64x192xf32>
    %2 = tpu.matmul %0, %1, %cst {dimension_numbers = #tpu.dot_dimension_numbers<[1], [0], [0], [1], [0, 0, 1, 1], [], []>} : vector<64x18xf32>, vector<18x192xf32>, vector<64x192xf32> -> vector<64x192xf32>
    %c0_3 = arith.constant 0 : index
    %c0_4 = arith.constant 0 : index
    %3 = vector.load %arg3[%c0_3, %c0_4] : memref<1x192xf32, #tpu.memory_space<vmem>>, vector<1x192xf32>
    %4 = vector.broadcast %3 : vector<1x192xf32> to vector<64x192xf32>
    %5 = arith.addf %2, %4 : vector<64x192xf32>
    %6 = math.tanh %5 : vector<64x192xf32>
    %c0_5 = arith.constant 0 : index
    %c0_6 = arith.constant 0 : index
    %7 = vector.load %arg4[%c0_5, %c0_6] : memref<192x192xf32, #tpu.memory_space<vmem>>, vector<192x192xf32>
    %cst_7 = arith.constant dense<0.000000e+00> : vector<64x192xf32>
    %8 = tpu.matmul %6, %7, %cst_7 {dimension_numbers = #tpu.dot_dimension_numbers<[1], [0], [0], [1], [0, 0, 1, 1], [], []>} : vector<64x192xf32>, vector<192x192xf32>, vector<64x192xf32> -> vector<64x192xf32>
    %c0_8 = arith.constant 0 : index
    %c0_9 = arith.constant 0 : index
    %9 = vector.load %arg5[%c0_8, %c0_9] : memref<1x192xf32, #tpu.memory_space<vmem>>, vector<1x192xf32>
    %10 = vector.broadcast %9 : vector<1x192xf32> to vector<64x192xf32>
    %11 = arith.addf %8, %10 : vector<64x192xf32>
    %12 = math.tanh %11 : vector<64x192xf32>
    %c0_10 = arith.constant 0 : index
    %c0_11 = arith.constant 0 : index
    %13 = vector.load %arg6[%c0_10, %c0_11] : memref<192x12xf32, #tpu.memory_space<vmem>>, vector<192x12xf32>
    %cst_12 = arith.constant dense<0.000000e+00> : vector<64x12xf32>
    %14 = tpu.matmul %12, %13, %cst_12 {dimension_numbers = #tpu.dot_dimension_numbers<[1], [0], [0], [1], [0, 0, 1, 1], [], []>} : vector<64x192xf32>, vector<192x12xf32>, vector<64x12xf32> -> vector<64x12xf32>
    %c0_13 = arith.constant 0 : index
    %c0_14 = arith.constant 0 : index
    %15 = vector.load %arg7[%c0_13, %c0_14] : memref<1x12xf32, #tpu.memory_space<vmem>>, vector<1x12xf32>
    %16 = vector.broadcast %15 : vector<1x12xf32> to vector<64x12xf32>
    %17 = arith.addf %14, %16 : vector<64x12xf32>
    %c0_15 = arith.constant 0 : index
    %c0_16 = arith.constant 0 : index
    %18 = vector.load %arg8[%c0_15, %c0_16] : memref<64x12xf32, #tpu.memory_space<vmem>>, vector<64x12xf32>
    tpu.vector_store %arg8[%c0_15, %c0_16], %17 {strides = array<i32>} : memref<64x12xf32, #tpu.memory_space<vmem>>, vector<64x12xf32>,
    return
  }
  func.func @transform_0(%arg0: i32) -> (i32, i32) {
    %c0_i32 = arith.constant 0 : i32
    %c0_i32_0 = arith.constant 0 : i32
    return %arg0, %c0_i32 : i32, i32
  }
  func.func @transform_1(%arg0: i32) -> (i32, i32) {
    %c0_i32 = arith.constant 0 : i32
    %c0_i32_0 = arith.constant 0 : i32
    %c0_i32_1 = arith.constant 0 : i32
    return %c0_i32, %c0_i32_0 : i32, i32
  }
  func.func @transform_2(%arg0: i32) -> (i32, i32) {
    %c0_i32 = arith.constant 0 : i32
    %c0_i32_0 = arith.constant 0 : i32
    %c0_i32_1 = arith.constant 0 : i32
    return %c0_i32, %c0_i32_0 : i32, i32
  }
  func.func @transform_3(%arg0: i32) -> (i32, i32) {
    %c0_i32 = arith.constant 0 : i32
    %c0_i32_0 = arith.constant 0 : i32
    %c0_i32_1 = arith.constant 0 : i32
    return %c0_i32, %c0_i32_0 : i32, i32
  }
  func.func @transform_4(%arg0: i32) -> (i32, i32) {
    %c0_i32 = arith.constant 0 : i32
    %c0_i32_0 = arith.constant 0 : i32
    %c0_i32_1 = arith.constant 0 : i32
    return %c0_i32, %c0_i32_0 : i32, i32
  }
  func.func @transform_5(%arg0: i32) -> (i32, i32) {
    %c0_i32 = arith.constant 0 : i32
    %c0_i32_0 = arith.constant 0 : i32
    %c0_i32_1 = arith.constant 0 : i32
    return %c0_i32, %c0_i32_0 : i32, i32
  }
  func.func @transform_6(%arg0: i32) -> (i32, i32) {
    %c0_i32 = arith.constant 0 : i32
    %c0_i32_0 = arith.constant 0 : i32
    %c0_i32_1 = arith.constant 0 : i32
    return %c0_i32, %c0_i32_0 : i32, i32
  }
  func.func @transform_7(%arg0: i32) -> (i32, i32) {
    %c0_i32 = arith.constant 0 : i32
    %c0_i32_0 = arith.constant 0 : i32
    return %arg0, %c0_i32 : i32, i32
  }
}

</mosaic_0001>

<bundles_post_ra>
// kernel: tpu_custom_call.1
= control target key start
LH: loop header
LB: loop body
LE: loop exit
PB: predicated region body
PF: predicated region fallthrough
CT: control target
= control target key end

     0   :  { %12 = vsyncpa [#allocation3], 0  ;;  %s823_s24 = smov [#allocation2]   ;;  %s1113_s0 = inlined_call_operand.vmem [shape: f32[64,18], index: 0, kind: input, shape index: {}]   ;;  %s1114_s1 = inlined_call_operand.vmem [shape: f32[18,192], index: 1, kind: input, shape index: {}]   ;;  %s1115_s2 = inlined_call_operand.vmem [shape: f32[1,192], index: 2, kind: input, shape index: {}]   ;;  %s1116_s3 = inlined_call_operand.hbm [shape: f32[192,192], index: 3, kind: input, shape index: {}]   ;;  %s1117_s4 = inlined_call_operand.vmem [shape: f32[1,192], index: 4, kind: input, shape index: {}]   ;;  %s1118_s5 = inlined_call_operand.vmem [shape: f32[192,12], index: 5, kind: input, shape index: {}]   ;;  %s1119_s6 = inlined_call_operand.vmem [shape: f32[1,12], index: 6, kind: input, shape index: {}]   ;;  %s1120_s7 = inlined_call_operand.vmem [shape: f32[64,12], index: 7, kind: output, shape index: {}]  }
   0x1   :  { %s24_s25 = sshll.u32 %s823_s24, 4  ;;  %s799_s28 = scalar_lea.hbm %s1116_s3, 6144  ;;  %s25_s25 = int_to_ptr.vmem [resolvable:$true] %s24_s25 }
   0x2   :  { %p800_p0 = scmp.ne.s32.totalorder %s1116_s3, %s799_s28  ;;  %p803_p1 = scmp.lt.u32.totalorder %s799_s28, %s1116_s3 }
   0x4   :  { %p805_p2 = pnand %p803_p1, %p800_p0 }
   0x6   :  { %808 = shalt.err (!%p805_p2)
}
   0x7   :  { %s809_s10 = scalar_lea.vmem %s25_s25, 6144  ;;  %p814_p4 = scmp.lt.s32.totalorder %s25_s25, %s25_s25 }
   0x8   :  { %p810_p3 = scmp.ne.s32.totalorder %s25_s25, %s809_s10  ;;  %p815_p5 = scmp.lt.s32.totalorder %s809_s10, %s809_s10 }
   0xa   :  { %p816_p6 = por %p815_p5, %p814_p4 }
   0xc   :  { %p817_p7 = pnand %p816_p6, %p810_p3 }
   0xe   :  { %820 = shalt.err (!%p817_p7)
}
   0xf   :  { %s824_s11 = smov 256   ;;  %s825_s12 = smov 16  }
  0x10   :  { %30 = dma.hbm_to_vmem [thread:$0]  %s1116_s3, 6144, %s25_s25, [#allocation3], %s824_s11, %s824_s11, %s825_s12  }
  0x11   :  { %821 = dma.done.wait [#allocation3], 6144  }
  0x12   :  { %822 = vsyncadd [#allocation3], 4294961152  ;;  %v826_v0 = vmov 0.0   ;;  %v49_v1 = vld [vmem:[%s1114_s1 + $0x8] sm:$0xff]  ;;  %v51_v2 = vld [vmem:[%s1114_s1 + $0x18] sm:$0xff]  ;;  %vm91_vm0 = vcmask 1041408  }
  0x13   :  { %162 = vmatprep.mubr.f32.mxu0 %v826_v0  ;;  %v48_v3 = vld [vmem:[%s1114_s1] sm:$0xff]  ;;  %v642_v4 = vpack.c.bf16 %v51_v2, %v49_v1  ;;  %v50_v5 = vld [vmem:[%s1114_s1 + $0x10] sm:$0xff]  ;;  %v53_v7 = vld [vmem:[%s1114_s1 + $0x28] sm:$0x3]  ;;  %vm66_vm1 = vcmask 146432   ;;  %vm287_vm2 = vcmask 523264  }
  0x14   :  { %v644_v6 = vpack.c.bf16 %v50_v5, %v48_v3  ;;  %v52_v8 = vld [vmem:[%s1114_s1 + $0x20] sm:$0x3]  ;;  %v228_v10 = vld [vmem:[#allocation2 + $0x8] sm:$0xff]  ;;  %v230_v11 = vld [vmem:[#allocation2 + $0x18] sm:$0xff]  ;;  %vm601_vm3 = vcmask 97280  }
  0x15   :  { %643 = vmatprep.subr.bf16.mxu0 %v642_v4  ;;  %v40_v9 = vld [vmem:[%s1113_s0] sm:$0xff]  ;;  %v229_v13 = vld [vmem:[#allocation2 + $0x10] sm:$0xff]  ;;  %v646_v14 = vpack.c.bf16 %v230_v11, %v228_v10  ;;  %v232_v16 = vld [vmem:[#allocation2 + $0x28] sm:$0xff] }
  0x16   :  { %645 = vmatpush1.bf16.msra.mxu0 %v644_v6  ;;  %v227_v12 = vld [vmem:[#allocation2] sm:$0xff]  ;;  %v234_v17 = vld [vmem:[#allocation2 + $0x38] sm:$0xff]  ;;  %v233_v20 = vld [vmem:[#allocation2 + $0x30] sm:$0xff] }
  0x17   :  { %615 = vmatprep.subr.msk.mxu0 %vm91_vm0, %v53_v7  ;;  %v648_v15 = vpack.c.bf16 %v229_v13, %v227_v12  ;;  %v231_v18 = vld [vmem:[#allocation2 + $0x20] sm:$0xff]  ;;  %v650_v19 = vpack.c.bf16 %v234_v17, %v232_v16  ;;  %v236_v21 = vld [vmem:[#allocation2 + $0x48] sm:$0xff]  ;;  %v238_v22 = vld [vmem:[#allocation2 + $0x58] sm:$0xff]  ;;  %647 = vmatprep.subr.bf16.mxu1 %v646_v14 }
  0x18   :  { %v652_v23 = vpack.c.bf16 %v233_v20, %v231_v18  ;;  %v41_v24 = vld [vmem:[%s1113_s0 + $0x8] sm:$0xff]  ;;  %v654_v25 = vpack.c.bf16 %v238_v22, %v236_v21  ;;  %v235_v26 = vld [vmem:[#allocation2 + $0x40] sm:$0xff]  ;;  %v237_v27 = vld [vmem:[#allocation2 + $0x50] sm:$0xff] }
  0x19   :  { %649 = vmatpush1.bf16.msra.mxu1 %v648_v15  ;;  %v240_v28 = vld [vmem:[#allocation2 + $0x68] sm:$0xff]  ;;  %v242_v29 = vld [vmem:[#allocation2 + $0x78] sm:$0xff]  ;;  %v656_v30 = vpack.c.bf16 %v237_v27, %v235_v26  ;;  %v42_v31 = vld [vmem:[%s1113_s0 + $0x10] sm:$0xff] }
  0x1a   :  { %616 = vmatpush1.msk.msra.mxu0 %vm91_vm0, %v52_v8  ;;  %651 = vmatprep.subr.bf16.mxu1 %v650_v19  ;;  %v658_v32 = vpack.c.bf16 %v242_v29, %v240_v28  ;;  %v239_v33 = vld [vmem:[#allocation2 + $0x60] sm:$0xff]  ;;  %v241_v34 = vld [vmem:[#allocation2 + $0x70] sm:$0xff]  ;;  %v244_v35 = vld [vmem:[#allocation2 + $0x88] sm:$0xff]  ;;  %v827_v28 = vmov 0.0|0.0  }
  0x1b   :  { %617 = vmatmul.mubr.msk.f32.vlgmr.msra.gmra.mrb[0].mxu0 %vm66_vm1, %v40_v9  ;;  %v246_v36 = vld [vmem:[#allocation2 + $0x98] sm:$0xff]  ;;  %v660_v37 = vpack.c.bf16 %v241_v34, %v239_v33  ;;  %v243_v40 = vld [vmem:[#allocation2 + $0x80] sm:$0xff]  ;;  %v245_v41 = vld [vmem:[#allocation2 + $0x90] sm:$0xff]  ;;  %694 = vmatprep.subr.bf16.mxu0 %v827_v28 }
  0x1c   :  { %168 = vmatprep.mubr.f32.mxu0 %v826_v0  ;;  %v43_v38 = vld [vmem:[%s1113_s0 + $0x18] sm:$0xff]  ;;  %v662_v39 = vpack.c.bf16 %v246_v36, %v244_v35  ;;  %v248_v42 = vld [vmem:[#allocation2 + $0xa8] sm:$0xff]  ;;  %v664_v44 = vpack.c.bf16 %v245_v41, %v243_v40  ;;  %v44_v45 = vld [vmem:[%s1113_s0 + $0x20] sm:$0xff] }
  0x1d   :  { %653 = vmatpush1.bf16.msra.mxu1 %v652_v23  ;;  %v250_v43 = vld [vmem:[#allocation2 + $0xb8] sm:$0xff]  ;;  %v247_v47 = vld [vmem:[#allocation2 + $0xa0] sm:$0xff]  ;;  %v249_v48 = vld [vmem:[#allocation2 + $0xb0] sm:$0xff] }
  0x1e   :  { %655 = vmatprep.subr.bf16.mxu1 %v654_v25  ;;  %v666_v46 = vpack.c.bf16 %v250_v43, %v248_v42  ;;  %v252_v49 = vld [vmem:[#allocation2 + $0xc8] sm:$0xff]  ;;  %v254_v50 = vld [vmem:[#allocation2 + $0xd8] sm:$0xff]  ;;  %v668_v51 = vpack.c.bf16 %v249_v48, %v247_v47  ;;  %v251_v54 = vld [vmem:[#allocation2 + $0xc0] sm:$0xff] }
  0x1f   :  { %618 = vmatmul.mubr.msk.f32.gmra.mrb[2].mxu0 %vm66_vm1, %v41_v24  ;;  %v45_v52 = vld [vmem:[%s1113_s0 + $0x28] sm:$0xff]  ;;  %v670_v53 = vpack.c.bf16 %v254_v50, %v252_v49  ;;  %v253_v55 = vld [vmem:[#allocation2 + $0xd0] sm:$0xff]  ;;  %v258_v57 = vld [vmem:[#allocation2 + $0xf8] sm:$0xff]  ;;  %v56_v50 = vlaneseq }
  0x20   :  { %174 = vmatprep.mubr.f32.mxu0 %v826_v0  ;;  %v256_v56 = vld [vmem:[#allocation2 + $0xe8] sm:$0xff]  ;;  %v672_v58 = vpack.c.bf16 %v253_v55, %v251_v54  ;;  %v46_v59 = vld [vmem:[%s1113_s0 + $0x30] sm:$0xff]  ;;  %v255_v61 = vld [vmem:[#allocation2 + $0xe0] sm:$0xff] }
  0x21   :  { %657 = vmatpush1.bf16.msra.mxu1 %v656_v30  ;;  %v674_v60 = vpack.c.bf16 %v258_v57, %v256_v56  ;;  %v257_v62 = vld [vmem:[#allocation2 + $0xf0] sm:$0xff]  ;;  %v47_v1 = vld [vmem:[%s1113_s0 + $0x38] sm:$0xff]  ;;  %v260_v2 = vld [vmem:[#allocation2 + $0x108] sm:$0xff] }
  0x22   :  { %659 = vmatprep.subr.bf16.mxu1 %v658_v32  ;;  %v676_v63 = vpack.c.bf16 %v257_v62, %v255_v61  ;;  %v262_v3 = vld [vmem:[#allocation2 + $0x118] sm:$0xff]  ;;  %v259_v5 = vld [vmem:[#allocation2 + $0x100] sm:$0xff]  ;;  %v261_v6 = vld [vmem:[#allocation2 + $0x110] sm:$0xff] }
  0x23   :  { %619 = vmatmul.mubr.msk.f32.gmra.mrb[4].mxu0 %vm66_vm1, %v42_v31  ;;  %v678_v4 = vpack.c.bf16 %v262_v3, %v260_v2  ;;  %v680_v7 = vpack.c.bf16 %v261_v6, %v259_v5  ;;  %v264_v8 = vld [vmem:[#allocation2 + $0x128] sm:$0xff]  ;;  %v266_v9 = vld [vmem:[#allocation2 + $0x138] sm:$0xff]  ;;  %v265_v11 = vld [vmem:[#allocation2 + $0x130] sm:$0xff] }
  0x24   :  { %180 = vmatprep.mubr.f32.mxu0 %v826_v0  ;;  %v682_v10 = vpack.c.bf16 %v266_v9, %v264_v8  ;;  %v268_v13 = vld [vmem:[#allocation2 + $0x148] sm:$0xff]  ;;  %v270_v14 = vld [vmem:[#allocation2 + $0x158] sm:$0xff]  ;;  %v267_v16 = vld [vmem:[#allocation2 + $0x140] sm:$0xff] }
  0x25   :  { %661 = vmatpush1.bf16.msra.mxu1 %v660_v37  ;;  %v686_v15 = vpack.c.bf16 %v270_v14, %v268_v13  ;;  %v269_v17 = vld [vmem:[#allocation2 + $0x150] sm:$0xff]  ;;  %v272_v19 = vld [vmem:[#allocation2 + $0x168] sm:$0xff]  ;;  %v274_v20 = vld [vmem:[#allocation2 + $0x178] sm:$0xff] }
  0x26   :  { %663 = vmatprep.subr.bf16.mxu1 %v662_v39  ;;  %v688_v18 = vpack.c.bf16 %v269_v17, %v267_v16  ;;  %v690_v21 = vpack.c.bf16 %v274_v20, %v272_v19  ;;  %v271_v22 = vld [vmem:[#allocation2 + $0x160] sm:$0xff]  ;;  %v273_v23 = vld [vmem:[#allocation2 + $0x170] sm:$0xff]  ;;  %v442_v26 = vld [vmem:[%s1118_s5 + $0x8] sm:$0xff] }
  0x27   :  { %620 = vmatmul.mubr.msk.f32.gmra.mrb[6].mxu0 %vm66_vm1, %v43_v38  ;;  %v692_v24 = vpack.c.bf16 %v273_v23, %v271_v22  ;;  %v441_v25 = vld [vmem:[%s1118_s5] sm:$0xff]  ;;  %v443_v27 = vld [vmem:[%s1118_s5 + $0x10] sm:$0xff]  ;;  %v444_v30 = vld [vmem:[%s1118_s5 + $0x18] sm:$0xff] }
  0x28   :  { %186 = vmatprep.mubr.f32.mxu0 %v826_v0  ;;  %v695_v29 = vpack.c.bf16 %v442_v26, %v441_v25  ;;  %v698_v31 = vpack.c.bf16 %v444_v30, %v443_v27  ;;  %v445_v32 = vld [vmem:[%s1118_s5 + $0x20] sm:$0xff]  ;;  %v446_v33 = vld [vmem:[%s1118_s5 + $0x28] sm:$0xff]  ;;  %v447_v35 = vld [vmem:[%s1118_s5 + $0x30] sm:$0xff] }
  0x29   :  { %665 = vmatpush1.bf16.msra.mxu1 %v664_v44  ;;  %v701_v34 = vpack.c.bf16 %v446_v33, %v445_v32  ;;  %v448_v36 = vld [vmem:[%s1118_s5 + $0x38] sm:$0xff]  ;;  %v449_v38 = vld [vmem:[%s1118_s5 + $0x40] sm:$0xff]  ;;  %v450_v39 = vld [vmem:[%s1118_s5 + $0x48] sm:$0xff] }
  0x2a   :  { %667 = vmatprep.subr.bf16.mxu1 %v666_v46  ;;  %696 = vmatpush1.bf16.msra.mxu0 %v695_v29  ;;  %v704_v37 = vpack.c.bf16 %v448_v36, %v447_v35  ;;  %v707_v40 = vpack.c.bf16 %v450_v39, %v449_v38  ;;  %v451_v41 = vld [vmem:[%s1118_s5 + $0x50] sm:$0xff]  ;;  %v452_v42 = vld [vmem:[%s1118_s5 + $0x58] sm:$0xff]  ;;  %v453_v44 = vld [vmem:[%s1118_s5 + $0x60] sm:$0xff] }
  0x2b   :  { %621 = vmatmul.mubr.msk.f32.gmra.mrb[8].mxu0 %vm66_vm1, %v44_v45  ;;  %697 = vmatprep.subr.bf16.mxu0 %v827_v28  ;;  %v710_v43 = vpack.c.bf16 %v452_v42, %v451_v41  ;;  %v454_v45 = vld [vmem:[%s1118_s5 + $0x68] sm:$0xff]  ;;  %v455_v47 = vld [vmem:[%s1118_s5 + $0x70] sm:$0xff]  ;;  %v456_v48 = vld [vmem:[%s1118_s5 + $0x78] sm:$0xff] }
  0x2c   :  { %192 = vmatprep.mubr.f32.mxu0 %v826_v0  ;;  %v713_v46 = vpack.c.bf16 %v454_v45, %v453_v44  ;;  %v716_v49 = vpack.c.bf16 %v456_v48, %v455_v47  ;;  %v457_v42 = vld [vmem:[%s1118_s5 + $0x80] sm:$0xff]  ;;  %v459_v45 = vld [vmem:[%s1118_s5 + $0x90] sm:$0xff] }
  0x2d   :  { %669 = vmatpush1.bf16.msra.mxu1 %v668_v51  ;;  %v997_v51 = vshrl.u32 %v56_v50, 7  ;;  %v461_v48 = vld [vmem:[%s1118_s5 + $0xa0] sm:$0xff] }
  0x2e   :  { %671 = vmatprep.subr.bf16.mxu1 %v670_v53  ;;  %699 = vmatpush1.bf16.msra.mxu0 %v698_v31  ;;  %v54_v53 = vld [vmem:[%s1115_s2] sm:$0x3] }
  0x2f   :  { %622 = vmatmul.mubr.msk.f32.gmra.mrb[10].mxu0 %vm66_vm1, %v45_v52  ;;  %700 = vmatprep.subr.bf16.mxu0 %v827_v28  ;;  %v58_v52 = vsub.s32 0, %v997_v51  ;;  %v62_v54 = vsub.s32 1, %v997_v51 }
  0x30   :  { %198 = vmatprep.mubr.f32.mxu0 %v826_v0 }
  0x31   :  { %673 = vmatpush1.bf16.msra.mxu1 %v672_v58  ;;  %v59_v55 = vrot.slane %v54_v53, %v58_v52  ;;  %v1008_v56 = vrot.slane %v54_v53, %v62_v54  ;;  %v463_v53 = vld [vmem:[%s1118_s5 + $0xb0] sm:$0xff] }
  0x32   :  { %675 = vmatprep.subr.bf16.mxu1 %v674_v60  ;;  %702 = vmatpush1.bf16.msra.mxu0 %v701_v34 }
  0x33   :  { %623 = vmatmul.mubr.msk.f32.gmra.mrb[12].mxu0 %vm66_vm1, %v46_v59  ;;  %703 = vmatprep.subr.bf16.mxu0 %v827_v28 }
  0x34   :  { %204 = vmatprep.mubr.f32.mxu0 %v826_v0  ;;  %v263_v0 = vld [vmem:[#allocation2 + $0x120] sm:$0xff] }
  0x35   :  { %677 = vmatpush1.bf16.msra.mxu1 %v676_v63  ;;  %v684_v12 = vpack.c.bf16 %v265_v11, %v263_v0 }
  0x36   :  { %679 = vmatprep.subr.bf16.mxu1 %v678_v4  ;;  %705 = vmatpush1.bf16.msra.mxu0 %v704_v37 }
  0x37   :  { %624 = vmatmul.mubr.msk.f32.gmra.mrb[14].mxu0 %vm66_vm1, %v47_v1  ;;  %706 = vmatprep.subr.bf16.mxu0 %v827_v28 }
  0x39   :  { %681 = vmatpush1.bf16.msra.mxu1 %v680_v7 }
  0x3a   :  { %683 = vmatprep.subr.bf16.mxu1 %v682_v10  ;;  %708 = vmatpush1.bf16.msra.mxu0 %v707_v40 }
  0x3b   :  { %709 = vmatprep.subr.bf16.mxu0 %v827_v28 }
  0x3d   :  { %685 = vmatpush1.bf16.msra.mxu1 %v684_v12 }
  0x3e   :  { %687 = vmatprep.subr.bf16.mxu1 %v686_v15  ;;  %711 = vmatpush1.bf16.msra.mxu0 %v710_v43  ;;  %v458_v43 = vld [vmem:[%s1118_s5 + $0x88] sm:$0xff] }
  0x3f   :  { %712 = vmatprep.subr.bf16.mxu0 %v827_v28  ;;  %v719_v44 = vpack.c.bf16 %v458_v43, %v457_v42 }
  0x41   :  { %689 = vmatpush1.bf16.msra.mxu1 %v688_v18 }
  0x42   :  { %691 = vmatprep.subr.bf16.mxu1 %v690_v21  ;;  %714 = vmatpush1.bf16.msra.mxu0 %v713_v46  ;;  %v460_v46 = vld [vmem:[%s1118_s5 + $0x98] sm:$0xff] }
  0x43   :  { %715 = vmatprep.subr.bf16.mxu0 %v827_v28  ;;  %v722_v47 = vpack.c.bf16 %v460_v46, %v459_v45 }
  0x45   :  { %693 = vmatpush1.bf16.msra.mxu1 %v692_v24 }
  0x46   :  { %717 = vmatpush1.bf16.msra.mxu0 %v716_v49  ;;  %v462_v49 = vld [vmem:[%s1118_s5 + $0xa8] sm:$0xff] }
  0x47   :  { %718 = vmatprep.subr.bf16.mxu0 %v827_v28  ;;  %v725_v50 = vpack.c.bf16 %v462_v49, %v461_v48 }
  0x4a   :  { %720 = vmatpush1.bf16.msra.mxu0 %v719_v44 }
  0x4b   :  { %721 = vmatprep.subr.bf16.mxu0 %v827_v28 }
  0x4e   :  { %723 = vmatpush1.bf16.msra.mxu0 %v722_v47 }
  0x4f   :  { %724 = vmatprep.subr.bf16.mxu0 %v827_v28 }
  0x52   :  { %726 = vmatpush1.bf16.msra.mxu0 %v725_v50 }
  0x53   :  { %727 = vmatprep.subr.bf16.mxu0 %v827_v28 }
  0xee   :  { %v164_v57 = vpop.f32.mrb[0].mxu0 }
  0xef   :  { %v165_v58 = vadd.f32 %v164_v57, %v59_v55  ;;  %v166_v59 = vpop.f32.mrb[1].mxu0  ;;  %v275_v57 = vld [vmem:[%s1117_s4] sm:$0x3] }
  0xf0   :  { %v167_v60 = vadd.f32 %v166_v59, %v1008_v56  ;;  %v1060_v28 = vrot.slane %v275_v57, %v62_v54 }
  0xf2   :  { %735 = vtanh.f32 %v167_v60  ;;  %v170_v61 = vpop.f32.mrb[2].mxu0 }
  0xf3   :  { %737 = vtanh.f32 %v165_v58  ;;  %v171_v62 = vadd.f32 %v170_v61, %v59_v55  ;;  %v172_v63 = vpop.f32.mrb[3].mxu0  ;;  %v280_v58 = vrot.slane %v275_v57, %v58_v52 }
  0xf4   :  { %v173_v1 = vadd.f32 %v172_v63, %v1008_v56 }
  0xf6   :  { %739 = vtanh.f32 %v173_v1  ;;  %v176_v2 = vpop.f32.mrb[4].mxu0 }
  0xf7   :  { %741 = vtanh.f32 %v171_v62  ;;  %v177_v3 = vadd.f32 %v176_v2, %v59_v55  ;;  %v178_v4 = vpop.f32.mrb[5].mxu0 }
  0xf8   :  { %v179_v5 = vadd.f32 %v178_v4, %v1008_v56 }
  0xfa   :  { %743 = vtanh.f32 %v179_v5  ;;  %v182_v6 = vpop.f32.mrb[6].mxu0 }
  0xfb   :  { %745 = vtanh.f32 %v177_v3  ;;  %v183_v7 = vadd.f32 %v182_v6, %v59_v55  ;;  %v184_v8 = vpop.f32.mrb[7].mxu0 }
  0xfc   :  { %v736_v9 = vpop.eup %735  ;;  %v185_v10 = vadd.f32 %v184_v8, %v1008_v56 }
  0xfd   :  { %v738_v0 = vpop.eup %737  ;;  %625 = vmatprep.mubr.msk.f32.mxu1 %vm287_vm2, %v736_v9 }
  0xfe   :  { %747 = vtanh.f32 %v185_v10  ;;  %v188_v11 = vpop.f32.mrb[8].mxu0  ;;  %377 = vmatmul.mubr.f32.vlgmr.msra.gmra.mrb[0].mxu1 %v738_v0 }
  0xff   :  { %749 = vtanh.f32 %v183_v7  ;;  %v189_v12 = vadd.f32 %v188_v11, %v59_v55  ;;  %v190_v13 = vpop.f32.mrb[9].mxu0 }
 0x100   :  { %v740_v14 = vpop.eup %739  ;;  %v191_v15 = vadd.f32 %v190_v13, %v1008_v56 }
 0x101   :  { %v742_v16 = vpop.eup %741  ;;  %626 = vmatprep.mubr.msk.f32.mxu1 %vm287_vm2, %v740_v14 }
 0x102   :  { %751 = vtanh.f32 %v191_v15  ;;  %v194_v17 = vpop.f32.mrb[10].mxu0  ;;  %383 = vmatmul.mubr.f32.gmra.mrb[2].mxu1 %v742_v16 }
 0x103   :  { %753 = vtanh.f32 %v189_v12  ;;  %v195_v18 = vadd.f32 %v194_v17, %v59_v55  ;;  %v196_v19 = vpop.f32.mrb[11].mxu0 }
 0x104   :  { %v744_v20 = vpop.eup %743  ;;  %v197_v21 = vadd.f32 %v196_v19, %v1008_v56 }
 0x105   :  { %v746_v22 = vpop.eup %745  ;;  %627 = vmatprep.mubr.msk.f32.mxu1 %vm287_vm2, %v744_v20 }
 0x106   :  { %755 = vtanh.f32 %v197_v21  ;;  %v200_v23 = vpop.f32.mrb[12].mxu0  ;;  %389 = vmatmul.mubr.f32.gmra.mrb[4].mxu1 %v746_v22 }
 0x107   :  { %757 = vtanh.f32 %v195_v18  ;;  %v201_v24 = vadd.f32 %v200_v23, %v59_v55  ;;  %v202_v25 = vpop.f32.mrb[13].mxu0 }
 0x108   :  { %v748_v26 = vpop.eup %747  ;;  %v203_v27 = vadd.f32 %v202_v25, %v1008_v56 }
 0x109   :  { %v750_v29 = vpop.eup %749  ;;  %628 = vmatprep.mubr.msk.f32.mxu1 %vm287_vm2, %v748_v26 }
 0x10a   :  { %759 = vtanh.f32 %v203_v27  ;;  %v206_v30 = vpop.f32.mrb[14].mxu0  ;;  %395 = vmatmul.mubr.f32.gmra.mrb[6].mxu1 %v750_v29 }
 0x10b   :  { %761 = vtanh.f32 %v201_v24  ;;  %v207_v31 = vadd.f32 %v206_v30, %v59_v55  ;;  %v208_v32 = vpop.f32.mrb[15].mxu0  ;;  %v464_v55 = vld [vmem:[%s1118_s5 + $0xb8] sm:$0xff] }
 0x10c   :  { %v752_v33 = vpop.eup %751  ;;  %v209_v34 = vadd.f32 %v208_v32, %v1008_v56  ;;  %v728_v56 = vpack.c.bf16 %v464_v55, %v463_v53 }
 0x10d   :  { %v754_v35 = vpop.eup %753  ;;  %629 = vmatprep.mubr.msk.f32.mxu1 %vm287_vm2, %v752_v33 }
 0x10e   :  { %763 = vtanh.f32 %v209_v34  ;;  %401 = vmatmul.mubr.f32.gmra.mrb[8].mxu1 %v754_v35  ;;  %729 = vmatpush1.bf16.msra.mxu0 %v728_v56 }
 0x10f   :  { %765 = vtanh.f32 %v207_v31 }
 0x110   :  { %v756_v36 = vpop.eup %755 }
 0x111   :  { %v758_v37 = vpop.eup %757  ;;  %630 = vmatprep.mubr.msk.f32.mxu1 %vm287_vm2, %v756_v36 }
 0x112   :  { %407 = vmatmul.mubr.f32.gmra.mrb[10].mxu1 %v758_v37 }
 0x114   :  { %v760_v38 = vpop.eup %759 }
 0x115   :  { %v762_v39 = vpop.eup %761  ;;  %631 = vmatprep.mubr.msk.f32.mxu1 %vm287_vm2, %v760_v38 }
 0x116   :  { %413 = vmatmul.mubr.f32.gmra.mrb[12].mxu1 %v762_v39 }
 0x118   :  { %v764_v40 = vpop.eup %763 }
 0x119   :  { %v766_v41 = vpop.eup %765  ;;  %632 = vmatprep.mubr.msk.f32.mxu1 %vm287_vm2, %v764_v40 }
 0x11a   :  { %419 = vmatmul.mubr.f32.gmra.mrb[14].mxu1 %v766_v41  ;;  %v633_v41 = vld [vmem:[%s1119_s6] ss:$0 sm:$0xff] }
 0x1d1   :  { %v378_v59 = vpop.f32.mrb[0].mxu1 }
 0x1d2   :  { %v379_v60 = vadd.f32 %v378_v59, %v280_v58  ;;  %v380_v61 = vpop.f32.mrb[1].mxu1 }
 0x1d3   :  { %v381_v62 = vadd.f32 %v380_v61, %v1060_v28 }
 0x1d5   :  { %767 = vtanh.f32 %v381_v62  ;;  %v384_v63 = vpop.f32.mrb[2].mxu1 }
 0x1d6   :  { %769 = vtanh.f32 %v379_v60  ;;  %v385_v1 = vadd.f32 %v384_v63, %v280_v58  ;;  %v386_v2 = vpop.f32.mrb[3].mxu1 }
 0x1d7   :  { %v387_v3 = vadd.f32 %v386_v2, %v1060_v28 }
 0x1d9   :  { %771 = vtanh.f32 %v387_v3  ;;  %v390_v4 = vpop.f32.mrb[4].mxu1 }
 0x1da   :  { %773 = vtanh.f32 %v385_v1  ;;  %v391_v52 = vadd.f32 %v390_v4, %v280_v58  ;;  %v392_v5 = vpop.f32.mrb[5].mxu1 }
 0x1db   :  { %v393_v51 = vadd.f32 %v392_v5, %v1060_v28 }
 0x1dd   :  { %775 = vtanh.f32 %v393_v51  ;;  %v396_v54 = vpop.f32.mrb[6].mxu1 }
 0x1de   :  { %777 = vtanh.f32 %v391_v52  ;;  %v397_v6 = vadd.f32 %v396_v54, %v280_v58  ;;  %v398_v7 = vpop.f32.mrb[7].mxu1 }
 0x1df   :  { %v768_v8 = vpop.eup %767  ;;  %v399_v9 = vadd.f32 %v398_v7, %v1060_v28 }
 0x1e0   :  { %v770_v10 = vpop.eup %769  ;;  %634 = vmatprep.mubr.msk.f32.mxu0 %vm287_vm2, %v768_v8 }
 0x1e1   :  { %779 = vtanh.f32 %v399_v9  ;;  %v402_v0 = vpop.f32.mrb[8].mxu1  ;;  %561 = vmatmul.mubr.f32.vlgmr.msra.gmra.mrb[16].mxu0 %v770_v10 }
 0x1e2   :  { %781 = vtanh.f32 %v397_v6  ;;  %v403_v11 = vadd.f32 %v402_v0, %v280_v58  ;;  %v404_v12 = vpop.f32.mrb[9].mxu1 }
 0x1e3   :  { %v772_v13 = vpop.eup %771  ;;  %v405_v14 = vadd.f32 %v404_v12, %v1060_v28 }
 0x1e4   :  { %v774_v15 = vpop.eup %773  ;;  %635 = vmatprep.mubr.msk.f32.mxu0 %vm287_vm2, %v772_v13 }
 0x1e5   :  { %783 = vtanh.f32 %v405_v14  ;;  %v408_v16 = vpop.f32.mrb[10].mxu1  ;;  %566 = vmatmul.mubr.f32.gmra.mrb[18].mxu0 %v774_v15 }
 0x1e6   :  { %785 = vtanh.f32 %v403_v11  ;;  %v409_v17 = vadd.f32 %v408_v16, %v280_v58  ;;  %v410_v18 = vpop.f32.mrb[11].mxu1 }
 0x1e7   :  { %v776_v19 = vpop.eup %775  ;;  %v411_v20 = vadd.f32 %v410_v18, %v1060_v28 }
 0x1e8   :  { %v778_v21 = vpop.eup %777  ;;  %636 = vmatprep.mubr.msk.f32.mxu0 %vm287_vm2, %v776_v19 }
 0x1e9   :  { %787 = vtanh.f32 %v411_v20  ;;  %v414_v22 = vpop.f32.mrb[12].mxu1  ;;  %571 = vmatmul.mubr.f32.gmra.mrb[20].mxu0 %v778_v21 }
 0x1ea   :  { %789 = vtanh.f32 %v409_v17  ;;  %v415_v23 = vadd.f32 %v414_v22, %v280_v58  ;;  %v416_v24 = vpop.f32.mrb[13].mxu1 }
 0x1eb   :  { %v780_v25 = vpop.eup %779  ;;  %v417_v26 = vadd.f32 %v416_v24, %v1060_v28 }
 0x1ec   :  { %v782_v27 = vpop.eup %781  ;;  %637 = vmatprep.mubr.msk.f32.mxu0 %vm287_vm2, %v780_v25 }
 0x1ed   :  { %791 = vtanh.f32 %v417_v26  ;;  %v420_v29 = vpop.f32.mrb[14].mxu1  ;;  %576 = vmatmul.mubr.f32.gmra.mrb[22].mxu0 %v782_v27 }
 0x1ee   :  { %793 = vtanh.f32 %v415_v23  ;;  %v421_v30 = vadd.f32 %v420_v29, %v280_v58  ;;  %v422_v31 = vpop.f32.mrb[15].mxu1 }
 0x1ef   :  { %v784_v32 = vpop.eup %783  ;;  %v423_v33 = vadd.f32 %v422_v31, %v1060_v28 }
 0x1f0   :  { %v786_v34 = vpop.eup %785  ;;  %638 = vmatprep.mubr.msk.f32.mxu0 %vm287_vm2, %v784_v32 }
 0x1f1   :  { %795 = vtanh.f32 %v423_v33  ;;  %581 = vmatmul.mubr.f32.gmra.mrb[24].mxu0 %v786_v34 }
 0x1f2   :  { %797 = vtanh.f32 %v421_v30 }
 0x1f3   :  { %v788_v35 = vpop.eup %787 }
 0x1f4   :  { %v790_v36 = vpop.eup %789  ;;  %639 = vmatprep.mubr.msk.f32.mxu0 %vm287_vm2, %v788_v35 }
 0x1f5   :  { %586 = vmatmul.mubr.f32.gmra.mrb[26].mxu0 %v790_v36 }
 0x1f7   :  { %v792_v37 = vpop.eup %791 }
 0x1f8   :  { %v794_v38 = vpop.eup %793  ;;  %640 = vmatprep.mubr.msk.f32.mxu0 %vm287_vm2, %v792_v37 }
 0x1f9   :  { %591 = vmatmul.mubr.f32.gmra.mrb[28].mxu0 %v794_v38 }
 0x1fb   :  { %v796_v39 = vpop.eup %795 }
 0x1fc   :  { %v798_v40 = vpop.eup %797  ;;  %641 = vmatprep.mubr.msk.f32.mxu0 %vm287_vm2, %v796_v39 }
 0x1fd   :  { %596 = vmatmul.mubr.f32.gmra.mrb[30].mxu0 %v798_v40 }
 0x2b4   :  { %v562_v42 = vpop.f32.mrb[16].mxu0 }
 0x2b5   :  { %v563_v43 = vadd.f32 %v633_v41, %v562_v42  ;;  %v564_v44 = vpop.f32.mrb[17].mxu0 }
 0x2b7   :  { %602 = vst.msk [vmem:[%s1120_s7] sm:$0xff] %vm601_vm3, %v563_v43 }
 0x2b8   :  { %v567_v45 = vpop.f32.mrb[18].mxu0 }
 0x2b9   :  { %v568_v46 = vadd.f32 %v633_v41, %v567_v45  ;;  %v569_v47 = vpop.f32.mrb[19].mxu0 }
 0x2bb   :  { %603 = vst.msk [vmem:[%s1120_s7 + $0x8] sm:$0xff] %vm601_vm3, %v568_v46 }
 0x2bc   :  { %v572_v48 = vpop.f32.mrb[20].mxu0 }
 0x2bd   :  { %v573_v49 = vadd.f32 %v633_v41, %v572_v48  ;;  %v574_v50 = vpop.f32.mrb[21].mxu0 }
 0x2bf   :  { %604 = vst.msk [vmem:[%s1120_s7 + $0x10] sm:$0xff] %vm601_vm3, %v573_v49 }
 0x2c0   :  { %v577_v53 = vpop.f32.mrb[22].mxu0 }
 0x2c1   :  { %v578_v55 = vadd.f32 %v633_v41, %v577_v53  ;;  %v579_v56 = vpop.f32.mrb[23].mxu0 }
 0x2c3   :  { %605 = vst.msk [vmem:[%s1120_s7 + $0x18] sm:$0xff] %vm601_vm3, %v578_v55 }
 0x2c4   :  { %v582_v57 = vpop.f32.mrb[24].mxu0 }
 0x2c5   :  { %v583_v58 = vadd.f32 %v633_v41, %v582_v57  ;;  %v584_v28 = vpop.f32.mrb[25].mxu0 }
 0x2c7   :  { %606 = vst.msk [vmem:[%s1120_s7 + $0x20] sm:$0xff] %vm601_vm3, %v583_v58 }
 0x2c8   :  { %v587_v59 = vpop.f32.mrb[26].mxu0 }
 0x2c9   :  { %v588_v60 = vadd.f32 %v633_v41, %v587_v59  ;;  %v589_v61 = vpop.f32.mrb[27].mxu0 }
 0x2cb   :  { %607 = vst.msk [vmem:[%s1120_s7 + $0x28] sm:$0xff] %vm601_vm3, %v588_v60 }
 0x2cc   :  { %v592_v62 = vpop.f32.mrb[28].mxu0 }
 0x2cd   :  { %v593_v63 = vadd.f32 %v633_v41, %v592_v62  ;;  %v594_v1 = vpop.f32.mrb[29].mxu0 }
 0x2cf   :  { %608 = vst.msk [vmem:[%s1120_s7 + $0x30] sm:$0xff] %vm601_vm3, %v593_v63 }
 0x2d0   :  { %v597_v2 = vpop.f32.mrb[30].mxu0 }
 0x2d1   :  { %v598_v3 = vadd.f32 %v633_v41, %v597_v2  ;;  %v599_v4 = vpop.f32.mrb[31].mxu0 }
 0x2d3   :  { %609 = vst.msk [vmem:[%s1120_s7 + $0x38] sm:$0xff] %vm601_vm3, %v598_v3 }
 0x2d4   :  { %614 = vsyncpa [#allocation3], 1 }

</bundles_post_ra>
